<compile_context>
chip_gen: v7x
topology: tpu7x:2x2x1
jax: 0.10.0
libtpu: 0.0.40
codegen_flags: <defaults>
</compile_context>

<pallas_src>
import functools

import jax
import jax.numpy as jnp
from jax.experimental import pallas as pl
from jax.experimental.pallas import tpu as pltpu

BN_EPS = 1e-5
LANE = 128


def predictor_kernel(h, x_ref, w_ref, gb_ref, out_ref):
    """x_ref: (B, D) f32, w_ref: (h+1, D, D) bf16, gb_ref: (h, 2, D) f32,
    out_ref: (B, D) f32. Everything VMEM-resident (shapes are tiny)."""
    B = x_ref.shape[0]
    inv_b = 1.0 / B

    x = x_ref[...]                                   # (B, D) f32
    ones_row = jnp.ones((1, B), jnp.float32)         # for MXU-based column sums

    for i in range(h):
        w = w_ref[i]                                 # (D, D) bf16 (zero-padded)

        # Linear (no bias): bf16 inputs on the MXU, f32 accumulation.
        y = jnp.dot(x.astype(jnp.bfloat16), w,
                    preferred_element_type=jnp.float32)          # (B, D) f32

        # BatchNorm1d (training mode), one-pass stats via the MXU:
        #   sum(y) and sum(y*y) as (1,B) @ (B,D) matmuls.
        s1 = jnp.dot(ones_row, y, preferred_element_type=jnp.float32)       # (1, D)
        s2 = jnp.dot(ones_row, y * y, preferred_element_type=jnp.float32)   # (1, D)
        mean = s1 * inv_b
        var = jnp.maximum(s2 * inv_b - mean * mean, 0.0)         # biased batch var

        gb = gb_ref[i]                               # (2, D) f32: [gamma; beta]
        gamma = gb[0:1, :]
        beta = gb[1:2, :]

        # Fused scale/shift: y_hat = y*scale + shift
        scale = gamma * jax.lax.rsqrt(var + BN_EPS)              # (1, D)
        shift = beta - mean * scale                              # (1, D)

        # BN apply + ReLU
        x = jnp.maximum(y * scale + shift, 0.0)

    w_final = w_ref[h]                               # (D, D) bf16 (zero-padded)
    out_ref[...] = jnp.dot(x.astype(jnp.bfloat16), w_final,
                           preferred_element_type=jnp.float32)


def _pad2(a, rows, cols):
    return jnp.pad(a, ((0, rows - a.shape[0]), (0, cols - a.shape[1])))


def predictor_forward(x, hidden_params, w_final):
    """x: (B, n_input) f32; hidden_params: list of (w(in,out), gamma(1,nh), beta(1,nh));
    w_final: (n_hidden, n_out). Returns (B, n_out) f32."""
    h = len(hidden_params)
    B, n_in = x.shape
    n_out = w_final.shape[1]

    def rup(v):
        return max(LANE, ((v + LANE - 1) // LANE) * LANE)

    # One common padded feature dim so all weights stack into a single slab.
    dims = [rup(n_in), rup(w_final.shape[0]), rup(n_out)]
    for (w, _, _) in hidden_params:
        dims += [rup(w.shape[0]), rup(w.shape[1])]
    D = max(dims)

    # Pack all linear weights into one (h+1, D, D) bf16 slab (zero-padded).
    w_slabs = [_pad2(w, D, D) for (w, _, _) in hidden_params]
    w_slabs.append(_pad2(w_final, D, D))
    w_packed = jnp.stack(w_slabs).astype(jnp.bfloat16)           # (h+1, D, D)

    # Pack gamma/beta into one (h, 2, D) f32 slab (zero-padded -> padded lanes stay 0).
    if h > 0:
        gb_packed = jnp.stack(
            [_pad2(jnp.concatenate([g, b], axis=0), 2, D) for (_, g, b) in hidden_params]
        ).astype(jnp.float32)                                    # (h, 2, D)
    else:
        gb_packed = jnp.zeros((1, 2, D), jnp.float32)            # dummy, unused

    x_pad = _pad2(x.astype(jnp.float32), B, D)                   # (B, D)

    kernel = functools.partial(predictor_kernel, h)

    out_pad = pl.pallas_call(
        kernel,
        out_shape=jax.ShapeDtypeStruct((B, D), jnp.float32),
        in_specs=[
            pl.BlockSpec((B, D), lambda: (0, 0)),
            pl.BlockSpec(w_packed.shape, lambda: (0, 0, 0)),
            pl.BlockSpec(gb_packed.shape, lambda: (0, 0, 0)),
        ],
        out_specs=pl.BlockSpec((B, D), lambda: (0, 0)),
        compiler_params=pltpu.CompilerParams(vmem_limit_bytes=4 * 1024 * 1024),
    )(x_pad, w_packed, gb_packed)

    return out_pad[:, :n_out]


def predictor_reference(x, hidden_params, w_final):
    """Pure-JAX f32 reference mirroring the PyTorch module semantics."""
    y = x.astype(jnp.float32)
    for (w, g, b) in hidden_params:
        y = y @ w
        mean = jnp.mean(y, axis=0, keepdims=True)
        var = jnp.mean((y - mean) ** 2, axis=0, keepdims=True)
        y = (y - mean) / jnp.sqrt(var + BN_EPS) * g + b
        y = jnp.maximum(y, 0.0)
    return y @ w_final


if __name__ == "__main__":
    # Small-shape config consistent with the module:
    #   Predictor(n_input=32, n_out=32, n_hidden=64, batch=True, h=2)
    B, n_input, n_hidden, n_out, h = 16, 32, 64, 32, 2

    key = jax.random.PRNGKey(0)
    keys = jax.random.split(key, 2 * h + 3)

    x = jax.random.normal(keys[0], (B, n_input), dtype=jnp.float32)

    hidden_params = []
    in_dim = n_input
    for i in range(h):
        # deterministic init; stored already transposed to (in, out)
        w = jax.random.normal(keys[1 + 2 * i], (in_dim, n_hidden), jnp.float32) * 0.05
        gamma = 1.0 + 0.1 * jax.random.normal(keys[2 + 2 * i], (1, n_hidden), jnp.float32)
        beta = 0.1 * jnp.ones((1, n_hidden), jnp.float32)
        hidden_params.append((w, gamma, beta))
        in_dim = n_hidden

    w_final = jax.random.normal(keys[-1], (n_hidden, n_out), jnp.float32) * 0.05

    out = predictor_forward(x, hidden_params, w_final)
    out = jax.block_until_ready(out)

    ref = predictor_reference(x, hidden_params, w_final)
    assert out.shape == (B, n_out)
    assert jnp.all(jnp.isfinite(out)), "non-finite output"
    # Tolerance accounts for bf16 MXU inputs (BN/accumulation stay f32).
    assert jnp.allclose(out, ref, atol=2e-2, rtol=2e-2), "mismatch vs reference"

    print("KERNEL_OK")
</pallas_src>

<mosaic_0001>
module attributes {stable_mosaic.version = 11 : i64} {
  func.func @predictor_kernel(%arg0: memref<16x128xf32, #tpu.memory_space<vmem>>, %arg1: memref<3x128x128xbf16, #tpu.memory_space<vmem>>, %arg2: memref<2x2x128xf32, #tpu.memory_space<vmem>>, %arg3: memref<16x128xf32, #tpu.memory_space<vmem>>) attributes {dimension_semantics = [], scalar_prefetch = 0 : i64, scratch_operands = 0 : i64, tpu.core_type = #tpu.core_type<tc>} {
    %c0 = arith.constant 0 : index
    %c0_0 = arith.constant 0 : index
    %0 = vector.load %arg0[%c0, %c0_0] : memref<16x128xf32, #tpu.memory_space<vmem>>, vector<16x128xf32>
    %cst = arith.constant 1.000000e+00 : f32
    %1 = vector.broadcast %cst : f32 to vector<1x16xf32>
    %c0_1 = arith.constant 0 : index
    %c0_2 = arith.constant 0 : index
    %c0_3 = arith.constant 0 : index
    %2 = vector.load %arg1[%c0_1, %c0_2, %c0_3] : memref<3x128x128xbf16, #tpu.memory_space<vmem>>, vector<1x128x128xbf16>
    %3 = vector.shape_cast %2 : vector<1x128x128xbf16> to vector<128x128xbf16>
    %4 = arith.truncf %0 : vector<16x128xf32> to vector<16x128xbf16>
    %cst_4 = arith.constant dense<0.000000e+00> : vector<16x128xf32>
    %5 = tpu.matmul %4, %3, %cst_4 {dimension_numbers = #tpu.dot_dimension_numbers<[1], [0], [0], [1], [0, 0, 1, 1], [], []>} : vector<16x128xbf16>, vector<128x128xbf16>, vector<16x128xf32> -> vector<16x128xf32>
    %cst_5 = arith.constant dense<0.000000e+00> : vector<1x128xf32>
    %6 = tpu.matmul %1, %5, %cst_5 {dimension_numbers = #tpu.dot_dimension_numbers<[1], [0], [0], [1], [0, 0, 1, 1], [], []>} : vector<1x16xf32>, vector<16x128xf32>, vector<1x128xf32> -> vector<1x128xf32>
    %7 = arith.mulf %5, %5 : vector<16x128xf32>
    %cst_6 = arith.constant dense<0.000000e+00> : vector<1x128xf32>
    %8 = tpu.matmul %1, %7, %cst_6 {dimension_numbers = #tpu.dot_dimension_numbers<[1], [0], [0], [1], [0, 0, 1, 1], [], []>} : vector<1x16xf32>, vector<16x128xf32>, vector<1x128xf32> -> vector<1x128xf32>
    %cst_7 = arith.constant 6.250000e-02 : f32
    %9 = vector.broadcast %cst_7 : f32 to vector<1x128xf32>
    %10 = arith.mulf %6, %9 : vector<1x128xf32>
    %cst_8 = arith.constant 6.250000e-02 : f32
    %11 = vector.broadcast %cst_8 : f32 to vector<1x128xf32>
    %12 = arith.mulf %8, %11 : vector<1x128xf32>
    %13 = arith.mulf %10, %10 : vector<1x128xf32>
    %14 = arith.subf %12, %13 : vector<1x128xf32>
    %cst_9 = arith.constant 0.000000e+00 : f32
    %15 = vector.broadcast %cst_9 : f32 to vector<1x128xf32>
    %16 = arith.maximumf %14, %15 : vector<1x128xf32>
    %c0_10 = arith.constant 0 : index
    %c0_11 = arith.constant 0 : index
    %c0_12 = arith.constant 0 : index
    %17 = vector.load %arg2[%c0_10, %c0_11, %c0_12] : memref<2x2x128xf32, #tpu.memory_space<vmem>>, vector<1x2x128xf32>
    %18 = vector.shape_cast %17 : vector<1x2x128xf32> to vector<2x128xf32>
    %19 = vector.extract_strided_slice %18 {offsets = [0, 0], sizes = [1, 128], strides = [1, 1]} : vector<2x128xf32> to vector<1x128xf32>
    %20 = vector.extract_strided_slice %18 {offsets = [1, 0], sizes = [1, 128], strides = [1, 1]} : vector<2x128xf32> to vector<1x128xf32>
    %cst_13 = arith.constant 9.99999974E-6 : f32
    %21 = vector.broadcast %cst_13 : f32 to vector<1x128xf32>
    %22 = arith.addf %16, %21 : vector<1x128xf32>
    %23 = math.rsqrt %22 : vector<1x128xf32>
    %24 = arith.mulf %19, %23 : vector<1x128xf32>
    %25 = arith.mulf %10, %24 : vector<1x128xf32>
    %26 = arith.subf %20, %25 : vector<1x128xf32>
    %27 = vector.broadcast %24 : vector<1x128xf32> to vector<16x128xf32>
    %28 = arith.mulf %5, %27 : vector<16x128xf32>
    %29 = vector.broadcast %26 : vector<1x128xf32> to vector<16x128xf32>
    %30 = arith.addf %28, %29 : vector<16x128xf32>
    %cst_14 = arith.constant 0.000000e+00 : f32
    %31 = vector.broadcast %cst_14 : f32 to vector<16x128xf32>
    %32 = arith.maximumf %30, %31 : vector<16x128xf32>
    %c1 = arith.constant 1 : index
    %c0_15 = arith.constant 0 : index
    %c0_16 = arith.constant 0 : index
    %33 = vector.load %arg1[%c1, %c0_15, %c0_16] : memref<3x128x128xbf16, #tpu.memory_space<vmem>>, vector<1x128x128xbf16>
    %34 = vector.shape_cast %33 : vector<1x128x128xbf16> to vector<128x128xbf16>
    %35 = arith.truncf %32 : vector<16x128xf32> to vector<16x128xbf16>
    %cst_17 = arith.constant dense<0.000000e+00> : vector<16x128xf32>
    %36 = tpu.matmul %35, %34, %cst_17 {dimension_numbers = #tpu.dot_dimension_numbers<[1], [0], [0], [1], [0, 0, 1, 1], [], []>} : vector<16x128xbf16>, vector<128x128xbf16>, vector<16x128xf32> -> vector<16x128xf32>
    %cst_18 = arith.constant dense<0.000000e+00> : vector<1x128xf32>
    %37 = tpu.matmul %1, %36, %cst_18 {dimension_numbers = #tpu.dot_dimension_numbers<[1], [0], [0], [1], [0, 0, 1, 1], [], []>} : vector<1x16xf32>, vector<16x128xf32>, vector<1x128xf32> -> vector<1x128xf32>
    %38 = arith.mulf %36, %36 : vector<16x128xf32>
    %cst_19 = arith.constant dense<0.000000e+00> : vector<1x128xf32>
    %39 = tpu.matmul %1, %38, %cst_19 {dimension_numbers = #tpu.dot_dimension_numbers<[1], [0], [0], [1], [0, 0, 1, 1], [], []>} : vector<1x16xf32>, vector<16x128xf32>, vector<1x128xf32> -> vector<1x128xf32>
    %cst_20 = arith.constant 6.250000e-02 : f32
    %40 = vector.broadcast %cst_20 : f32 to vector<1x128xf32>
    %41 = arith.mulf %37, %40 : vector<1x128xf32>
    %cst_21 = arith.constant 6.250000e-02 : f32
    %42 = vector.broadcast %cst_21 : f32 to vector<1x128xf32>
    %43 = arith.mulf %39, %42 : vector<1x128xf32>
    %44 = arith.mulf %41, %41 : vector<1x128xf32>
    %45 = arith.subf %43, %44 : vector<1x128xf32>
    %cst_22 = arith.constant 0.000000e+00 : f32
    %46 = vector.broadcast %cst_22 : f32 to vector<1x128xf32>
    %47 = arith.maximumf %45, %46 : vector<1x128xf32>
    %c1_23 = arith.constant 1 : index
    %c0_24 = arith.constant 0 : index
    %c0_25 = arith.constant 0 : index
    %48 = vector.load %arg2[%c1_23, %c0_24, %c0_25] : memref<2x2x128xf32, #tpu.memory_space<vmem>>, vector<1x2x128xf32>
    %49 = vector.shape_cast %48 : vector<1x2x128xf32> to vector<2x128xf32>
    %50 = vector.extract_strided_slice %49 {offsets = [0, 0], sizes = [1, 128], strides = [1, 1]} : vector<2x128xf32> to vector<1x128xf32>
    %51 = vector.extract_strided_slice %49 {offsets = [1, 0], sizes = [1, 128], strides = [1, 1]} : vector<2x128xf32> to vector<1x128xf32>
    %cst_26 = arith.constant 9.99999974E-6 : f32
    %52 = vector.broadcast %cst_26 : f32 to vector<1x128xf32>
    %53 = arith.addf %47, %52 : vector<1x128xf32>
    %54 = math.rsqrt %53 : vector<1x128xf32>
    %55 = arith.mulf %50, %54 : vector<1x128xf32>
    %56 = arith.mulf %41, %55 : vector<1x128xf32>
    %57 = arith.subf %51, %56 : vector<1x128xf32>
    %58 = vector.broadcast %55 : vector<1x128xf32> to vector<16x128xf32>
    %59 = arith.mulf %36, %58 : vector<16x128xf32>
    %60 = vector.broadcast %57 : vector<1x128xf32> to vector<16x128xf32>
    %61 = arith.addf %59, %60 : vector<16x128xf32>
    %cst_27 = arith.constant 0.000000e+00 : f32
    %62 = vector.broadcast %cst_27 : f32 to vector<16x128xf32>
    %63 = arith.maximumf %61, %62 : vector<16x128xf32>
    %c2 = arith.constant 2 : index
    %c0_28 = arith.constant 0 : index
    %c0_29 = arith.constant 0 : index
    %64 = vector.load %arg1[%c2, %c0_28, %c0_29] : memref<3x128x128xbf16, #tpu.memory_space<vmem>>, vector<1x128x128xbf16>
    %65 = vector.shape_cast %64 : vector<1x128x128xbf16> to vector<128x128xbf16>
    %66 = arith.truncf %63 : vector<16x128xf32> to vector<16x128xbf16>
    %cst_30 = arith.constant dense<0.000000e+00> : vector<16x128xf32>
    %67 = tpu.matmul %66, %65, %cst_30 {dimension_numbers = #tpu.dot_dimension_numbers<[1], [0], [0], [1], [0, 0, 1, 1], [], []>} : vector<16x128xbf16>, vector<128x128xbf16>, vector<16x128xf32> -> vector<16x128xf32>
    %c0_31 = arith.constant 0 : index
    %c0_32 = arith.constant 0 : index
    %68 = vector.load %arg3[%c0_31, %c0_32] : memref<16x128xf32, #tpu.memory_space<vmem>>, vector<16x128xf32>
    tpu.vector_store %arg3[%c0_31, %c0_32], %67 {strides = array<i32>} : memref<16x128xf32, #tpu.memory_space<vmem>>, vector<16x128xf32>,
    return
  }
}

</mosaic_0001>

<bundles_post_ra>
// kernel: tpu_custom_call.1
= control target key start
LH: loop header
LB: loop body
LE: loop exit
PB: predicated region body
PF: predicated region fallthrough
CT: control target
= control target key end

     0   :  { %8 = vsyncpa [#allocation3], 0  ;;  %s1151_s0 = inlined_call_operand.hbm [shape: f32[16,128], index: 0, kind: input, shape index: {}]   ;;  %s1152_s1 = inlined_call_operand.hbm [shape: bf16[3,128,128], index: 1, kind: input, shape index: {}]   ;;  %s1153_s2 = inlined_call_operand.vmem [shape: f32[2,2,128], index: 2, kind: input, shape index: {}]   ;;  %s1154_s3 = inlined_call_operand.hbm [shape: f32[16,128], index: 3, kind: output, shape index: {}]  }
   0x1   :  { %9 = vsyncpa [#allocation6], 0 }
   0x2   :  { %10 = vsyncpa [#allocation4], 0  ;;  %s1010_s12 = smov [#allocation2]   ;;  %s938_s16 = scalar_lea.hbm %s1151_s0, 256 }
   0x3   :  { %s16_s13 = sshll.u32 %s1010_s12, 4  ;;  %p939_p0 = scmp.ne.s32.totalorder %s1151_s0, %s938_s16  ;;  %s17_s13 = int_to_ptr.vmem [resolvable:$true] %s16_s13 }
   0x4   :  { %p942_p1 = scmp.lt.u32.totalorder %s938_s16, %s1151_s0 }
   0x6   :  { %p944_p2 = pnand %p942_p1, %p939_p0 }
   0x8   :  { %947 = shalt.err (!%p944_p2)
}
   0x9   :  { %s948_s21 = scalar_lea.vmem %s17_s13, 256  ;;  %p953_p4 = scmp.lt.s32.totalorder %s17_s13, %s17_s13 }
   0xa   :  { %p949_p3 = scmp.ne.s32.totalorder %s17_s13, %s948_s21  ;;  %p954_p5 = scmp.lt.s32.totalorder %s948_s21, %s948_s21 }
   0xc   :  { %p955_p6 = por %p954_p5, %p953_p4 }
   0xe   :  { %p956_p7 = pnand %p955_p6, %p949_p3 }
  0x10   :  { %959 = shalt.err (!%p956_p7)
}
  0x11   :  { %s1011_s22 = smov 128   ;;  %s1012_s23 = smov 8  }
  0x12   :  { %22 = dma.hbm_to_vmem [thread:$0]  %s1151_s0, 256, %s17_s13, [#allocation3], %s1011_s22, %s1011_s22, %s1012_s23  }
  0x13   :  { %s1013_s26 = smov [#allocation5]   ;;  %s960_s30 = scalar_lea.hbm %s1152_s1, 3072 }
  0x14   :  { %s28_s27 = sshll.u32 %s1013_s26, 4  ;;  %p961_p8 = scmp.ne.s32.totalorder %s1152_s1, %s960_s30  ;;  %s29_s27 = int_to_ptr.vmem [resolvable:$true] %s28_s27 }
  0x15   :  { %p964_p9 = scmp.lt.u32.totalorder %s960_s30, %s1152_s1 }
  0x17   :  { %p966_p10 = pnand %p964_p9, %p961_p8 }
  0x19   :  { %969 = shalt.err (!%p966_p10)
}
  0x1a   :  { %s970_s8 = scalar_lea.vmem %s29_s27, 3072  ;;  %p975_p12 = scmp.lt.s32.totalorder %s29_s27, %s29_s27 }
  0x1b   :  { %p971_p11 = scmp.ne.s32.totalorder %s29_s27, %s970_s8  ;;  %p976_p13 = scmp.lt.s32.totalorder %s970_s8, %s970_s8 }
  0x1d   :  { %p977_p0 = por %p976_p13, %p975_p12 }
  0x1f   :  { %p978_p1 = pnand %p977_p0, %p971_p11 }
  0x21   :  { %981 = shalt.err (!%p978_p1)
}
  0x22   :  { %s1014_s0 = smov 64   ;;  %s1015_s9 = smov 4  }
  0x23   :  { %34 = dma.hbm_to_vmem [thread:$0]  %s1152_s1, 3072, %s29_s27, [#allocation6], %s1014_s0, %s1014_s0, %s1015_s9  }
  0x24   :  { %1004 = dma.done.wait [#allocation3], 256  }
  0x25   :  { %1005 = vsyncadd [#allocation3], 4294967040 }
  0x26   :  { %1006 = dma.done.wait [#allocation6], 3072  }
  0x27   :  { %1007 = vsyncadd [#allocation6], 4294964224  ;;  %v1016_v0 = vmov 0.0   ;;  %vm1017_vm0 = vmmov 0   ;;  %v910_v1 = vld [vmem:[#allocation5] sm:$0xff]   ;;  %v911_v2 = vld [vmem:[#allocation5 + $0x8] sm:$0xff]   ;;  %v312_v40 = vlaneseq }
  0x28   :  { %799 = vmatprep.subr.bf16.mxu0 %v1016_v0  ;;  %815 = vmatprep.mubr.msk.bf16.mxu0 %vm1017_vm0, %v1016_v0  ;;  %v912_v3 = vld [vmem:[#allocation5 + $0x10] sm:$0xff]   ;;  %v913_v4 = vld [vmem:[#allocation5 + $0x18] sm:$0xff]   ;;  %v914_v5 = vld [vmem:[#allocation5 + $0x20] sm:$0xff]   ;;  %v1018_v12 = vmov 0.0|0.0   ;;  %vm152_vm1 = vcmask 130048   ;;  %v1019_v21 = vmov 1.0  }
  0x29   :  { %833 = vmatprep.subr.bf16.mxu1 %v1016_v0  ;;  %849 = vmatprep.mubr.msk.bf16.mxu1 %vm1017_vm0, %v1016_v0  ;;  %v915_v6 = vld [vmem:[#allocation5 + $0x28] sm:$0xff]   ;;  %v916_v7 = vld [vmem:[#allocation5 + $0x30] sm:$0xff]   ;;  %v917_v8 = vld [vmem:[#allocation5 + $0x38] sm:$0xff]   ;;  %v1102_v41 = vshrl.u32 %v312_v40, 7 }
  0x2a   :  { %800 = vmatpush3.bf16.msra.mxu0 %v910_v1  ;;  %v44_v9 = vld [vmem:[#allocation2] sm:$0xff]  ;;  %v45_v10 = vld [vmem:[#allocation2 + $0x8] sm:$0xff]  ;;  %v918_v22 = vld [vmem:[#allocation5 + $0x40] sm:$0xff]  }
  0x2b   :  { %801 = vmatprep.subr.bf16.mxu0 %v1016_v0  ;;  %v62_v11 = vpack.c.bf16 %v45_v10, %v44_v9  ;;  %834 = vmatpush3.bf16.msra.mxu1 %v918_v22  ;;  %v919_v23 = vld [vmem:[#allocation5 + $0x48] sm:$0xff]   ;;  %v920_v24 = vld [vmem:[#allocation5 + $0x50] sm:$0xff]   ;;  %v921_v25 = vld [vmem:[#allocation5 + $0x58] sm:$0xff]   ;;  %v314_v43 = vsub.s32 0, %v1102_v41  ;;  %v320_v51 = vsub.s32 1, %v1102_v41 }
  0x2c   :  { %835 = vmatprep.subr.bf16.mxu1 %v1016_v0  ;;  %v922_v26 = vld [vmem:[#allocation5 + $0x60] sm:$0xff]   ;;  %v923_v27 = vld [vmem:[#allocation5 + $0x68] sm:$0xff]   ;;  %v924_v28 = vld [vmem:[#allocation5 + $0x70] sm:$0xff]  }
  0x2d   :  { %v925_v29 = vld [vmem:[#allocation5 + $0x78] sm:$0xff]   ;;  %v303_v42 = vld [vmem:[%s1153_s2] sm:$0x3]  ;;  %v931_v9 = vld [vmem:[#allocation5 + $0xa8] sm:$0xff]  }
  0x2e   :  { %802 = vmatpush3.bf16.msra.mxu0 %v911_v2  ;;  %v932_v10 = vld [vmem:[#allocation5 + $0xb0] sm:$0xff]  }
  0x2f   :  { %803 = vmatprep.subr.bf16.mxu0 %v1016_v0  ;;  %836 = vmatpush3.bf16.msra.mxu1 %v919_v23  ;;  %v751_v22 = vld [vmem:[%s1153_s2 + $0x2] sm:$0x3]  ;;  %s1020_s2 = smov [#allocation7]  }
  0x30   :  { %837 = vmatprep.subr.bf16.mxu1 %v1016_v0  ;;  %s718_s15 = sshll.u32 %s1020_s2, 4  ;;  %s719_s15 = int_to_ptr.vmem [resolvable:$true] %s718_s15 }
  0x31   :  { %s982_s16 = scalar_lea.vmem %s719_s15, 256  ;;  %p987_p3 = scmp.lt.s32.totalorder %s719_s15, %s719_s15 }
  0x32   :  { %804 = vmatpush3.bf16.msra.mxu0 %v912_v3  ;;  %p983_p2 = scmp.ne.s32.totalorder %s719_s15, %s982_s16  ;;  %p988_p4 = scmp.lt.s32.totalorder %s982_s16, %s982_s16 }
  0x33   :  { %805 = vmatprep.subr.bf16.mxu0 %v1016_v0  ;;  %838 = vmatpush3.bf16.msra.mxu1 %v920_v24 }
  0x34   :  { %839 = vmatprep.subr.bf16.mxu1 %v1016_v0  ;;  %p989_p5 = por %p988_p4, %p987_p3 }
  0x36   :  { %806 = vmatpush3.bf16.msra.mxu0 %v913_v4  ;;  %v926_v4 = vld [vmem:[#allocation5 + $0x80] sm:$0xff]   ;;  %p990_p6 = pnand %p989_p5, %p983_p2 }
  0x37   :  { %807 = vmatprep.subr.bf16.mxu0 %v1016_v0  ;;  %840 = vmatpush3.bf16.msra.mxu1 %v921_v25 }
  0x38   :  { %841 = vmatprep.subr.bf16.mxu1 %v1016_v0 }
  0x3a   :  { %808 = vmatpush3.bf16.msra.mxu0 %v914_v5  ;;  %v927_v5 = vld [vmem:[#allocation5 + $0x88] sm:$0xff]  }
  0x3b   :  { %809 = vmatprep.subr.bf16.mxu0 %v1016_v0  ;;  %842 = vmatpush3.bf16.msra.mxu1 %v922_v26 }
  0x3c   :  { %843 = vmatprep.subr.bf16.mxu1 %v1016_v0 }
  0x3e   :  { %810 = vmatpush3.bf16.msra.mxu0 %v915_v6  ;;  %v928_v6 = vld [vmem:[#allocation5 + $0x90] sm:$0xff]  }
  0x3f   :  { %811 = vmatprep.subr.bf16.mxu0 %v1016_v0  ;;  %844 = vmatpush3.bf16.msra.mxu1 %v923_v27 }
  0x40   :  { %845 = vmatprep.subr.bf16.mxu1 %v1016_v0 }
  0x42   :  { %812 = vmatpush3.bf16.msra.mxu0 %v916_v7  ;;  %v929_v7 = vld [vmem:[#allocation5 + $0x98] sm:$0xff]  }
  0x43   :  { %813 = vmatprep.subr.bf16.mxu0 %v1016_v0  ;;  %846 = vmatpush3.bf16.msra.mxu1 %v924_v28 }
  0x44   :  { %847 = vmatprep.subr.bf16.mxu1 %v1016_v0 }
  0x46   :  { %814 = vmatpush3.bf16.msra.mxu0 %v917_v8  ;;  %v930_v8 = vld [vmem:[#allocation5 + $0xa0] sm:$0xff]  }
  0x47   :  { %887 = vmatprep.subr.bf16.mxu0 %v1018_v12  ;;  %848 = vmatpush3.bf16.msra.mxu1 %v925_v29 }
  0x48   :  { %867 = vmatprep.subr.bf16.mxu1 %v1016_v0 }
  0x49   :  { %816 = vmatmul.mubr.bf16.vlgmr.msra.gmra.mrb[0].mxu0 %v62_v11  ;;  %v933_v11 = vld [vmem:[#allocation5 + $0xb8] sm:$0xff]  }
  0x4a   :  { %823 = vmatprep.mubr.msk.f32.mxu0 %vm1017_vm0, %v1016_v0 }
 0x11c   :  { %v145_v13 = vpop.f32.mrb[0].mxu0 }
 0x11d   :  { %v817_v14 = vpop.f32.mrb[1].mxu0  ;;  %v226_v16 = vmul.f32 %v145_v13, %v145_v13 }
 0x11e   :  { %v148_v15 = vpop.f32.mrb[2].mxu0 }
 0x11f   :  { %v888_v17 = vpack.c.bf16 %v148_v15, %v145_v13  ;;  %v227_v18 = vmul.f32 %v148_v15, %v148_v15  ;;  %v818_v19 = vpop.f32.mrb[3].mxu0 }
 0x121   :  { %v891_v20 = vpack.c.bf16 %v227_v18, %v226_v16  ;;  %889 = vmatpush3.bf16.msra.mxu0 %v888_v17 }
 0x122   :  { %890 = vmatprep.subr.bf16.mxu0 %v1018_v12 }
 0x124   :  { %824 = vmatmul.mubr.msk.f32.vlgmr.msra.gmra.mrb[4].mxu0 %vm152_vm1, %v1019_v21 }
 0x125   :  { %892 = vmatpush3.bf16.msra.mxu0 %v891_v20  ;;  %830 = vmatprep.mubr.msk.f32.mxu0 %vm1017_vm0, %v1016_v0 }
 0x126   :  { %893 = vmatprep.subr.bf16.mxu0 %v1018_v12 }
 0x128   :  { %831 = vmatmul.mubr.msk.f32.vlgmr.msra.gmra.mrb[6].mxu0 %vm152_vm1, %v1019_v21 }
 0x129   :  { %857 = vmatprep.mubr.msk.f32.mxu0 %vm1017_vm0, %v1016_v0 }
 0x1f7   :  { %v222_v30 = vpop.f32.mrb[4].mxu0 }
 0x1f8   :  { %v298_v31 = vmul.f32 0.0625, %v222_v30  ;;  %v825_v32 = vpop.f32.mrb[5].mxu0 }
 0x1fa   :  { %v300_v34 = vmul.f32 %v298_v31, %v298_v31 }
 0x1fb   :  { %v294_v33 = vpop.f32.mrb[6].mxu0 }
 0x1fc   :  { %v299_v35 = vmul.f32 0.0625, %v294_v33  ;;  %v832_v36 = vpop.f32.mrb[7].mxu0 }
 0x1fe   :  { %v301_v37 = vsub.f32 %v299_v35, %v300_v34 }
 0x200   :  { %v302_v38 = vmax.f32 %v301_v37, 0.0 }
 0x202   :  { %v304_v39 = vadd.f32 1e-05, %v302_v38 }
 0x204   :  { %934 = vrsqrt.f32 %v304_v39 }
 0x20e   :  { %v935_v44 = vpop.eup %934 }
 0x20f   :  { %v306_v45 = vmul.f32 %v935_v44, %v303_v42 }
 0x211   :  { %v307_v46 = vmul.f32 %v306_v45, %v298_v31  ;;  %v315_v47 = vrot.slane %v306_v45, %v314_v43 }
 0x213   :  { %v309_v48 = vrot.slane %v307_v46, 7  ;;  %v316_v49 = vmul.f32 %v315_v47, %v145_v13  ;;  %v317_v50 = vmul.f32 %v315_v47, %v148_v15 }
 0x215   :  { %v311_v52 = vsub.f32 %v303_v42, %v309_v48 }
 0x217   :  { %v321_v53 = vrot.slane %v311_v52, %v320_v51 }
 0x219   :  { %v322_v54 = vadd.f32 %v321_v53, %v316_v49  ;;  %v323_v55 = vadd.f32 %v321_v53, %v317_v50 }
 0x21b   :  { %v324_v56 = vmax.f32 %v322_v54, 0.0  ;;  %v325_v57 = vmax.f32 %v323_v55, 0.0 }
 0x21d   :  { %v343_v58 = vpack.c.bf16 %v325_v57, %v324_v56 }
 0x21f   :  { %850 = vmatmul.mubr.bf16.vlgmr.msra.gmra.mrb[0].mxu1 %v343_v58 }
 0x220   :  { %883 = vmatprep.mubr.msk.bf16.mxu1 %vm1017_vm0, %v1016_v0  ;;  %868 = vmatpush3.bf16.msra.mxu1 %v926_v4 }
 0x221   :  { %869 = vmatprep.subr.bf16.mxu1 %v1016_v0 }
 0x224   :  { %870 = vmatpush3.bf16.msra.mxu1 %v927_v5 }
 0x225   :  { %871 = vmatprep.subr.bf16.mxu1 %v1016_v0 }
 0x228   :  { %872 = vmatpush3.bf16.msra.mxu1 %v928_v6 }
 0x229   :  { %873 = vmatprep.subr.bf16.mxu1 %v1016_v0 }
 0x22c   :  { %874 = vmatpush3.bf16.msra.mxu1 %v929_v7 }
 0x22d   :  { %875 = vmatprep.subr.bf16.mxu1 %v1016_v0 }
 0x230   :  { %876 = vmatpush3.bf16.msra.mxu1 %v930_v8 }
 0x231   :  { %877 = vmatprep.subr.bf16.mxu1 %v1016_v0 }
 0x234   :  { %878 = vmatpush3.bf16.msra.mxu1 %v931_v9 }
 0x235   :  { %879 = vmatprep.subr.bf16.mxu1 %v1016_v0 }
 0x238   :  { %880 = vmatpush3.bf16.msra.mxu1 %v932_v10 }
 0x239   :  { %881 = vmatprep.subr.bf16.mxu1 %v1016_v0 }
 0x23c   :  { %882 = vmatpush3.bf16.msra.mxu1 %v933_v11 }
 0x2f2   :  { %v426_v59 = vpop.f32.mrb[0].mxu1 }
 0x2f3   :  { %v851_v60 = vpop.f32.mrb[1].mxu1  ;;  %v503_v62 = vmul.f32 %v426_v59, %v426_v59 }
 0x2f4   :  { %v429_v61 = vpop.f32.mrb[2].mxu1 }
 0x2f5   :  { %v894_v63 = vpack.c.bf16 %v429_v61, %v426_v59  ;;  %v504_v1 = vmul.f32 %v429_v61, %v429_v61  ;;  %v852_v2 = vpop.f32.mrb[3].mxu1 }
 0x2f7   :  { %v897_v3 = vpack.c.bf16 %v504_v1, %v503_v62  ;;  %895 = vmatpush3.bf16.msra.mxu0 %v894_v63 }
 0x2f8   :  { %896 = vmatprep.subr.bf16.mxu0 %v1018_v12 }
 0x2fa   :  { %858 = vmatmul.mubr.msk.f32.vlgmr.msra.gmra.mrb[8].mxu0 %vm152_vm1, %v1019_v21 }
 0x2fb   :  { %898 = vmatpush3.bf16.msra.mxu0 %v897_v3  ;;  %864 = vmatprep.mubr.msk.f32.mxu0 %vm1017_vm0, %v1016_v0 }
 0x2fe   :  { %865 = vmatmul.mubr.msk.f32.vlgmr.msra.gmra.mrb[10].mxu0 %vm152_vm1, %v1019_v21 }
 0x3cd   :  { %v499_v12 = vpop.f32.mrb[8].mxu0 }
 0x3ce   :  { %v575_v13 = vmul.f32 0.0625, %v499_v12  ;;  %v859_v14 = vpop.f32.mrb[9].mxu0 }
 0x3d0   :  { %v577_v16 = vmul.f32 %v575_v13, %v575_v13 }
 0x3d1   :  { %v571_v15 = vpop.f32.mrb[10].mxu0 }
 0x3d2   :  { %v576_v17 = vmul.f32 0.0625, %v571_v15  ;;  %v866_v18 = vpop.f32.mrb[11].mxu0 }
 0x3d4   :  { %v578_v19 = vsub.f32 %v576_v17, %v577_v16 }
 0x3d6   :  { %v579_v20 = vmax.f32 %v578_v19, 0.0 }
 0x3d8   :  { %v582_v21 = vadd.f32 1e-05, %v579_v20 }
 0x3da   :  { %936 = vrsqrt.f32 %v582_v21 }
 0x3e4   :  { %v937_v23 = vpop.eup %936 }
 0x3e5   :  { %v584_v24 = vmul.f32 %v937_v23, %v751_v22 }
 0x3e7   :  { %v585_v25 = vmul.f32 %v584_v24, %v575_v13  ;;  %v593_v0 = vrot.slane %v584_v24, %v314_v43 }
 0x3e9   :  { %v587_v26 = vrot.slane %v585_v25, 7  ;;  %v594_v27 = vmul.f32 %v593_v0, %v426_v59  ;;  %v595_v28 = vmul.f32 %v593_v0, %v429_v61 }
 0x3eb   :  { %v589_v29 = vsub.f32 %v751_v22, %v587_v26 }
 0x3ed   :  { %v599_v30 = vrot.slane %v589_v29, %v320_v51 }
 0x3ef   :  { %v600_v31 = vadd.f32 %v599_v30, %v594_v27  ;;  %v601_v32 = vadd.f32 %v599_v30, %v595_v28 }
 0x3f1   :  { %v602_v33 = vmax.f32 %v600_v31, 0.0  ;;  %v603_v34 = vmax.f32 %v601_v32, 0.0 }
 0x3f3   :  { %v621_v35 = vpack.c.bf16 %v603_v34, %v602_v33 }
 0x3f5   :  { %884 = vmatmul.mubr.bf16.vlgmr.msra.gmra.mrb[4].mxu1 %v621_v35 }
 0x4c8   :  { %v704_v36 = vpop.f32.mrb[4].mxu1 }
 0x4c9   :  { %711 = vst [vmem:[#allocation7] sm:$0xff] %v704_v36  ;;  %v885_v37 = vpop.f32.mrb[5].mxu1 }
 0x4ca   :  { %v707_v38 = vpop.f32.mrb[6].mxu1 }
 0x4cb   :  { %712 = vst [vmem:[#allocation7 + $0x8] sm:$0xff] %v707_v38  ;;  %v886_v39 = vpop.f32.mrb[7].mxu1 }
 0x4cc   :  { %993 = shalt.err (!%p990_p6)
}
 0x4cd   :  { %s994_s19 = scalar_lea.hbm %s1154_s3, 256 }
 0x4ce   :  { %p995_p7 = scmp.ne.s32.totalorder %s1154_s3, %s994_s19  ;;  %p998_p8 = scmp.lt.u32.totalorder %s994_s19, %s1154_s3 }
 0x4d0   :  { %p1000_p9 = pnand %p998_p8, %p995_p7 }
 0x4d2   :  { %1003 = shalt.err (!%p1000_p9)
}
 0x4d3   :  { %724 = dma.vmem_to_hbm [thread:$0]  %s719_s15, 256, %s1154_s3, [#allocation4], %s1011_s22, %s1011_s22, %s1012_s23  }
 0x4d4   :  { %1008 = dma.done.wait [#allocation4], 256  }
 0x4d5   :  { %1009 = vsyncadd [#allocation4], 4294967040 }
 0x4d6   :  { %728 = vsyncpa [#allocation3], 1 }
 0x4d7   :  { %729 = vsyncpa [#allocation6], 1 }
 0x4d8   :  { %730 = vsyncpa [#allocation4], 1 }

</bundles_post_ra>
